<compile_context>
chip_gen: v6e
topology: v6e:2x2x1
jax: 0.10.0
libtpu: 0.0.40
codegen_flags: <defaults>
</compile_context>

<pallas_src>
import functools

import jax
import jax.numpy as jnp
from jax import lax
from jax.experimental import pallas as pl
from jax.experimental.pallas import tpu as pltpu  # noqa: F401  (TPU backend)

_LANES = 128


# ---------------------------------------------------------------------------
# Fused kernel: LSTM recurrence + Linear(H -> O) + Sigmoid epilogue.
# Inputs (all whole-array resident in VMEM, grid=()):
#   x_ref    : (T*B, I)      time-major flattened input
#   w_ref    : (I+H+1, 4H)   [wih^T ; whh^T ; bias_ih + bias_hh]
#   misc_ref : (H+1+B, W)    [wlin^T zero-padded ; blin zero-padded ; h0|c0]
# Output:
#   out_ref  : (B, 128)      [h_T (H) | c_T (H) | sigmoid(linear(h_T)) (128-2H)]
# ---------------------------------------------------------------------------
def _lstm_predictor_kernel(x_ref, w_ref, misc_ref, out_ref, *,
                           seq_len, batch, input_size, hidden_size, y_width):
    T, B, I, H = seq_len, batch, input_size, hidden_size

    # ---- one-time unpacking of the packed parameter slabs (pre-loop) ----
    wih = w_ref[0:I, :]                        # (I, 4H)
    whh = w_ref[I:I + H, :]                    # (H, 4H)
    bias = w_ref[I + H:I + H + 1, :]           # (1, 4H) == bias_ih + bias_hh

    wlin = misc_ref[0:H, 0:y_width]            # (H, y_width), zeros past O
    blin = misc_ref[H:H + 1, 0:y_width]        # (1, y_width)
    h = misc_ref[H + 1:H + 1 + B, 0:H]         # (B, H) initial hidden
    c = misc_ref[H + 1:H + 1 + B, H:2 * H]     # (B, H) initial cell

    # Hoisted input projection for ALL timesteps in one MXU call (time-major):
    #   (T*B, I) @ (I, 4H) -> (T*B, 4H); bias added once here.
    xw = jnp.dot(x_ref[...], wih, preferred_element_type=jnp.float32) + bias

    # Recurrence: h/c stay in vregs; fully unrolled (T small & static) so the
    # scheduler has cross-step visibility. Gate order matches nn.LSTM [i,f,g,o].
    for t in range(T):
        gates = xw[t * B:(t + 1) * B, :] + jnp.dot(
            h, whh, preferred_element_type=jnp.float32)        # (B, 4H)
        sig = jax.nn.sigmoid(gates)            # ONE EUP pass over full (B, 4H)
        g_g = jnp.tanh(gates[:, 2 * H:3 * H])  # ONE pass over the g block only
        i_g = sig[:, 0 * H:1 * H]
        f_g = sig[:, 1 * H:2 * H]
        o_g = sig[:, 3 * H:4 * H]
        c = f_g * c + i_g * g_g
        h = o_g * jnp.tanh(c)

    # Dropout(p=0) == identity; fused Linear + Sigmoid on the last hidden state
    # (the only timestep out.view(B,-1)[:, -1] can depend on). wlin/blin are
    # zero-padded to y_width lanes so the result is already lane-dense.
    y = jax.nn.sigmoid(
        jnp.dot(h, wlin, preferred_element_type=jnp.float32) + blin)   # (B, y_width)

    # Single unmasked lane-dense store: [h_T | c_T | y].
    out_ref[...] = jnp.concatenate([h, c, y], axis=-1).astype(out_ref.dtype)


@jax.jit
def lstm_predictor_forward(x, h0, c0, params):
    """Mirrors LstmPredictor.forward(x, h).

    x: (B, T, I) float32 (batch_first, like the PyTorch module)
    h0, c0: (nLayers=1, B, H)
    Returns (out, (hT, cT)) with out shape (B,), hT/cT shape (1, B, H).
    """
    wih, whh, bih, bhh, wlin, blin = (
        params["weight_ih"], params["weight_hh"], params["bias_ih"],
        params["bias_hh"], params["weight_lin"], params["bias_lin"])

    B, T, I = x.shape
    H = whh.shape[1]
    O = wlin.shape[0]

    y_w = _LANES - 2 * H
    assert O <= y_w, "output size must fit the packed (B, 128) output slab"
    misc_w = max(2 * H, y_w)

    # --- pack the 8 small arrays into 3 slabs (one-time, tiny) ---
    # time-major flattened x: row t*B + b == x[b, t]
    x_tm = jnp.swapaxes(x, 0, 1).reshape(T * B, I)

    # [wih^T ; whh^T ; bias_ih + bias_hh]  -> (I + H + 1, 4H)
    w_all = jnp.concatenate(
        [wih.T, whh.T, (bih + bhh).reshape(1, 4 * H)], axis=0).astype(jnp.float32)

    # [wlin^T padded ; blin padded ; h0|c0 padded]  -> (H + 1 + B, misc_w)
    wlin_p = jnp.zeros((H, misc_w), jnp.float32).at[:, :O].set(wlin.T)
    blin_p = jnp.zeros((1, misc_w), jnp.float32).at[:, :O].set(blin.reshape(1, O))
    state0 = jnp.zeros((B, misc_w), jnp.float32).at[:, :2 * H].set(
        jnp.concatenate([h0[0], c0[0]], axis=-1))
    misc = jnp.concatenate([wlin_p, blin_p, state0], axis=0)

    packed = pl.pallas_call(
        functools.partial(_lstm_predictor_kernel, seq_len=T, batch=B,
                          input_size=I, hidden_size=H, y_width=y_w),
        out_shape=jax.ShapeDtypeStruct((B, _LANES), jnp.float32),
    )(x_tm, w_all, misc)

    hT = packed[:, 0:H]
    cT = packed[:, H:2 * H]
    # out.view(batch, -1)[:, -1]  ==  last output feature of the last timestep.
    out = packed[:, 2 * H + O - 1]
    return out, (hT[None, ...], cT[None, ...])


# ---------------------------------------------------------------------------
# Pure-JAX reference (matches nn.LSTM + nn.Dropout(0) + nn.Linear + nn.Sigmoid)
# ---------------------------------------------------------------------------
def _ref_forward(x, h0, c0, params):
    wih, whh, bih, bhh, wlin, blin = (
        params["weight_ih"], params["weight_hh"], params["bias_ih"],
        params["bias_hh"], params["weight_lin"], params["bias_lin"])
    B, T, I = x.shape
    H = whh.shape[1]

    def step(carry, xt):
        h, c = carry
        gates = xt @ wih.T + h @ whh.T + bih + bhh
        i_g, f_g, g_g, o_g = jnp.split(gates, 4, axis=-1)
        i_g = jax.nn.sigmoid(i_g)
        f_g = jax.nn.sigmoid(f_g)
        g_g = jnp.tanh(g_g)
        o_g = jax.nn.sigmoid(o_g)
        c = f_g * c + i_g * g_g
        h = o_g * jnp.tanh(c)
        return (h, c), h

    (hT, cT), outs = lax.scan(step, (h0[0], c0[0]), jnp.swapaxes(x, 0, 1))
    lstm_flat = jnp.swapaxes(outs, 0, 1).reshape(B * T, H)
    y = jax.nn.sigmoid(lstm_flat @ wlin.T + blin)
    out = y.reshape(B, -1)[:, -1]
    return out, (hT[None, ...], cT[None, ...])


if __name__ == "__main__":
    # Config implied by the module: inputSize, hiddenSize, outputSize, seqLen, batch.
    B, T, I, H, O = 2, 8, 8, 32, 1

    key = jax.random.PRNGKey(0)
    ks = jax.random.split(key, 10)
    params = {
        "weight_ih":  0.1 * jax.random.normal(ks[0], (4 * H, I), jnp.float32),
        "weight_hh":  0.1 * jax.random.normal(ks[1], (4 * H, H), jnp.float32),
        "bias_ih":    0.1 * jax.random.normal(ks[2], (4 * H,), jnp.float32),
        "bias_hh":    0.1 * jax.random.normal(ks[3], (4 * H,), jnp.float32),
        "weight_lin": 0.1 * jax.random.normal(ks[4], (O, H), jnp.float32),
        "bias_lin":   0.1 * jax.random.normal(ks[5], (O,), jnp.float32),
    }

    x = jax.random.normal(ks[6], (B, T, I), jnp.float32)

    # Case 1: initHidden() zeros (as the module does).
    h0 = jnp.zeros((1, B, H), jnp.float32)
    c0 = jnp.zeros((1, B, H), jnp.float32)
    out, (hT, cT) = lstm_predictor_forward(x, h0, c0, params)
    jax.block_until_ready((out, hT, cT))
    ref_out, (ref_hT, ref_cT) = _ref_forward(x, h0, c0, params)
    assert out.shape == (B,)
    assert hT.shape == (1, B, H) and cT.shape == (1, B, H)
    assert jnp.allclose(out, ref_out, rtol=1e-4, atol=1e-4)
    assert jnp.allclose(hT, ref_hT, rtol=1e-4, atol=1e-4)
    assert jnp.allclose(cT, ref_cT, rtol=1e-4, atol=1e-4)

    # Case 2: nonzero initial hidden/cell state (per the correctness review).
    h0n = 0.5 * jax.random.normal(ks[7], (1, B, H), jnp.float32)
    c0n = 0.5 * jax.random.normal(ks[8], (1, B, H), jnp.float32)
    out2, (hT2, cT2) = lstm_predictor_forward(x, h0n, c0n, params)
    jax.block_until_ready((out2, hT2, cT2))
    ref_out2, (ref_hT2, ref_cT2) = _ref_forward(x, h0n, c0n, params)
    assert jnp.allclose(out2, ref_out2, rtol=1e-4, atol=1e-4)
    assert jnp.allclose(hT2, ref_hT2, rtol=1e-4, atol=1e-4)
    assert jnp.allclose(cT2, ref_cT2, rtol=1e-4, atol=1e-4)

    print("KERNEL_OK")
</pallas_src>

<mosaic_0001>
module attributes {stable_mosaic.version = 11 : i64} {
  func.func @_lstm_predictor_kernel(%arg0: memref<16x8xf32, #tpu.memory_space<vmem>>, %arg1: memref<41x128xf32, #tpu.memory_space<vmem>>, %arg2: memref<35x64xf32, #tpu.memory_space<vmem>>, %arg3: memref<2x128xf32, #tpu.memory_space<vmem>>) attributes {dimension_semantics = [], scalar_prefetch = 0 : i64, scratch_operands = 0 : i64, tpu.core_type = #tpu.core_type<tc>} {
    %c0 = arith.constant 0 : index
    %c0_0 = arith.constant 0 : index
    %0 = vector.load %arg1[%c0, %c0_0] : memref<41x128xf32, #tpu.memory_space<vmem>>, vector<8x128xf32>
    %c8 = arith.constant 8 : index
    %c0_1 = arith.constant 0 : index
    %1 = vector.load %arg1[%c8, %c0_1] : memref<41x128xf32, #tpu.memory_space<vmem>>, vector<32x128xf32>
    %c40 = arith.constant 40 : index
    %c0_2 = arith.constant 0 : index
    %2 = vector.load %arg1[%c40, %c0_2] : memref<41x128xf32, #tpu.memory_space<vmem>>, vector<1x128xf32>
    %c0_3 = arith.constant 0 : index
    %c0_4 = arith.constant 0 : index
    %3 = vector.load %arg2[%c0_3, %c0_4] : memref<35x64xf32, #tpu.memory_space<vmem>>, vector<32x64xf32>
    %c32 = arith.constant 32 : index
    %c0_5 = arith.constant 0 : index
    %4 = vector.load %arg2[%c32, %c0_5] : memref<35x64xf32, #tpu.memory_space<vmem>>, vector<1x64xf32>
    %c33 = arith.constant 33 : index
    %c0_6 = arith.constant 0 : index
    %5 = vector.load %arg2[%c33, %c0_6] : memref<35x64xf32, #tpu.memory_space<vmem>>, vector<2x32xf32>
    %c33_7 = arith.constant 33 : index
    %c32_8 = arith.constant 32 : index
    %6 = vector.load %arg2[%c33_7, %c32_8] : memref<35x64xf32, #tpu.memory_space<vmem>>, vector<2x32xf32>
    %c0_9 = arith.constant 0 : index
    %c0_10 = arith.constant 0 : index
    %7 = vector.load %arg0[%c0_9, %c0_10] : memref<16x8xf32, #tpu.memory_space<vmem>>, vector<16x8xf32>
    %cst = arith.constant dense<0.000000e+00> : vector<16x128xf32>
    %8 = tpu.matmul %7, %0, %cst {dimension_numbers = #tpu.dot_dimension_numbers<[1], [0], [0], [1], [0, 0, 1, 1], [], []>} : vector<16x8xf32>, vector<8x128xf32>, vector<16x128xf32> -> vector<16x128xf32>
    %9 = vector.broadcast %2 : vector<1x128xf32> to vector<16x128xf32>
    %10 = arith.addf %8, %9 : vector<16x128xf32>
    %11 = vector.extract_strided_slice %10 {offsets = [0, 0], sizes = [2, 128], strides = [1, 1]} : vector<16x128xf32> to vector<2x128xf32>
    %cst_11 = arith.constant dense<0.000000e+00> : vector<2x128xf32>
    %12 = tpu.matmul %5, %1, %cst_11 {dimension_numbers = #tpu.dot_dimension_numbers<[1], [0], [0], [1], [0, 0, 1, 1], [], []>} : vector<2x32xf32>, vector<32x128xf32>, vector<2x128xf32> -> vector<2x128xf32>
    %13 = arith.addf %11, %12 : vector<2x128xf32>
    %14 = arith.negf %13 : vector<2x128xf32>
    %15 = math.exp %14 : vector<2x128xf32>
    %cst_12 = arith.constant 1.000000e+00 : f32
    %16 = vector.broadcast %cst_12 : f32 to vector<2x128xf32>
    %17 = arith.addf %16, %15 : vector<2x128xf32>
    %18 = arith.divf %16, %17 : vector<2x128xf32>
    %19 = vector.extract_strided_slice %13 {offsets = [0, 64], sizes = [2, 32], strides = [1, 1]} : vector<2x128xf32> to vector<2x32xf32>
    %20 = math.tanh %19 : vector<2x32xf32>
    %21 = vector.extract_strided_slice %18 {offsets = [0, 0], sizes = [2, 32], strides = [1, 1]} : vector<2x128xf32> to vector<2x32xf32>
    %22 = vector.extract_strided_slice %18 {offsets = [0, 32], sizes = [2, 32], strides = [1, 1]} : vector<2x128xf32> to vector<2x32xf32>
    %23 = vector.extract_strided_slice %18 {offsets = [0, 96], sizes = [2, 32], strides = [1, 1]} : vector<2x128xf32> to vector<2x32xf32>
    %24 = arith.mulf %22, %6 : vector<2x32xf32>
    %25 = arith.mulf %21, %20 : vector<2x32xf32>
    %26 = arith.addf %24, %25 : vector<2x32xf32>
    %27 = math.tanh %26 : vector<2x32xf32>
    %28 = arith.mulf %23, %27 : vector<2x32xf32>
    %29 = vector.extract_strided_slice %10 {offsets = [2, 0], sizes = [2, 128], strides = [1, 1]} : vector<16x128xf32> to vector<2x128xf32>
    %cst_13 = arith.constant dense<0.000000e+00> : vector<2x128xf32>
    %30 = tpu.matmul %28, %1, %cst_13 {dimension_numbers = #tpu.dot_dimension_numbers<[1], [0], [0], [1], [0, 0, 1, 1], [], []>} : vector<2x32xf32>, vector<32x128xf32>, vector<2x128xf32> -> vector<2x128xf32>
    %31 = arith.addf %29, %30 : vector<2x128xf32>
    %32 = arith.negf %31 : vector<2x128xf32>
    %33 = math.exp %32 : vector<2x128xf32>
    %cst_14 = arith.constant 1.000000e+00 : f32
    %34 = vector.broadcast %cst_14 : f32 to vector<2x128xf32>
    %35 = arith.addf %34, %33 : vector<2x128xf32>
    %36 = arith.divf %34, %35 : vector<2x128xf32>
    %37 = vector.extract_strided_slice %31 {offsets = [0, 64], sizes = [2, 32], strides = [1, 1]} : vector<2x128xf32> to vector<2x32xf32>
    %38 = math.tanh %37 : vector<2x32xf32>
    %39 = vector.extract_strided_slice %36 {offsets = [0, 0], sizes = [2, 32], strides = [1, 1]} : vector<2x128xf32> to vector<2x32xf32>
    %40 = vector.extract_strided_slice %36 {offsets = [0, 32], sizes = [2, 32], strides = [1, 1]} : vector<2x128xf32> to vector<2x32xf32>
    %41 = vector.extract_strided_slice %36 {offsets = [0, 96], sizes = [2, 32], strides = [1, 1]} : vector<2x128xf32> to vector<2x32xf32>
    %42 = arith.mulf %40, %26 : vector<2x32xf32>
    %43 = arith.mulf %39, %38 : vector<2x32xf32>
    %44 = arith.addf %42, %43 : vector<2x32xf32>
    %45 = math.tanh %44 : vector<2x32xf32>
    %46 = arith.mulf %41, %45 : vector<2x32xf32>
    %47 = vector.extract_strided_slice %10 {offsets = [4, 0], sizes = [2, 128], strides = [1, 1]} : vector<16x128xf32> to vector<2x128xf32>
    %cst_15 = arith.constant dense<0.000000e+00> : vector<2x128xf32>
    %48 = tpu.matmul %46, %1, %cst_15 {dimension_numbers = #tpu.dot_dimension_numbers<[1], [0], [0], [1], [0, 0, 1, 1], [], []>} : vector<2x32xf32>, vector<32x128xf32>, vector<2x128xf32> -> vector<2x128xf32>
    %49 = arith.addf %47, %48 : vector<2x128xf32>
    %50 = arith.negf %49 : vector<2x128xf32>
    %51 = math.exp %50 : vector<2x128xf32>
    %cst_16 = arith.constant 1.000000e+00 : f32
    %52 = vector.broadcast %cst_16 : f32 to vector<2x128xf32>
    %53 = arith.addf %52, %51 : vector<2x128xf32>
    %54 = arith.divf %52, %53 : vector<2x128xf32>
    %55 = vector.extract_strided_slice %49 {offsets = [0, 64], sizes = [2, 32], strides = [1, 1]} : vector<2x128xf32> to vector<2x32xf32>
    %56 = math.tanh %55 : vector<2x32xf32>
    %57 = vector.extract_strided_slice %54 {offsets = [0, 0], sizes = [2, 32], strides = [1, 1]} : vector<2x128xf32> to vector<2x32xf32>
    %58 = vector.extract_strided_slice %54 {offsets = [0, 32], sizes = [2, 32], strides = [1, 1]} : vector<2x128xf32> to vector<2x32xf32>
    %59 = vector.extract_strided_slice %54 {offsets = [0, 96], sizes = [2, 32], strides = [1, 1]} : vector<2x128xf32> to vector<2x32xf32>
    %60 = arith.mulf %58, %44 : vector<2x32xf32>
    %61 = arith.mulf %57, %56 : vector<2x32xf32>
    %62 = arith.addf %60, %61 : vector<2x32xf32>
    %63 = math.tanh %62 : vector<2x32xf32>
    %64 = arith.mulf %59, %63 : vector<2x32xf32>
    %65 = vector.extract_strided_slice %10 {offsets = [6, 0], sizes = [2, 128], strides = [1, 1]} : vector<16x128xf32> to vector<2x128xf32>
    %cst_17 = arith.constant dense<0.000000e+00> : vector<2x128xf32>
    %66 = tpu.matmul %64, %1, %cst_17 {dimension_numbers = #tpu.dot_dimension_numbers<[1], [0], [0], [1], [0, 0, 1, 1], [], []>} : vector<2x32xf32>, vector<32x128xf32>, vector<2x128xf32> -> vector<2x128xf32>
    %67 = arith.addf %65, %66 : vector<2x128xf32>
    %68 = arith.negf %67 : vector<2x128xf32>
    %69 = math.exp %68 : vector<2x128xf32>
    %cst_18 = arith.constant 1.000000e+00 : f32
    %70 = vector.broadcast %cst_18 : f32 to vector<2x128xf32>
    %71 = arith.addf %70, %69 : vector<2x128xf32>
    %72 = arith.divf %70, %71 : vector<2x128xf32>
    %73 = vector.extract_strided_slice %67 {offsets = [0, 64], sizes = [2, 32], strides = [1, 1]} : vector<2x128xf32> to vector<2x32xf32>
    %74 = math.tanh %73 : vector<2x32xf32>
    %75 = vector.extract_strided_slice %72 {offsets = [0, 0], sizes = [2, 32], strides = [1, 1]} : vector<2x128xf32> to vector<2x32xf32>
    %76 = vector.extract_strided_slice %72 {offsets = [0, 32], sizes = [2, 32], strides = [1, 1]} : vector<2x128xf32> to vector<2x32xf32>
    %77 = vector.extract_strided_slice %72 {offsets = [0, 96], sizes = [2, 32], strides = [1, 1]} : vector<2x128xf32> to vector<2x32xf32>
    %78 = arith.mulf %76, %62 : vector<2x32xf32>
    %79 = arith.mulf %75, %74 : vector<2x32xf32>
    %80 = arith.addf %78, %79 : vector<2x32xf32>
    %81 = math.tanh %80 : vector<2x32xf32>
    %82 = arith.mulf %77, %81 : vector<2x32xf32>
    %83 = vector.extract_strided_slice %10 {offsets = [8, 0], sizes = [2, 128], strides = [1, 1]} : vector<16x128xf32> to vector<2x128xf32>
    %cst_19 = arith.constant dense<0.000000e+00> : vector<2x128xf32>
    %84 = tpu.matmul %82, %1, %cst_19 {dimension_numbers = #tpu.dot_dimension_numbers<[1], [0], [0], [1], [0, 0, 1, 1], [], []>} : vector<2x32xf32>, vector<32x128xf32>, vector<2x128xf32> -> vector<2x128xf32>
    %85 = arith.addf %83, %84 : vector<2x128xf32>
    %86 = arith.negf %85 : vector<2x128xf32>
    %87 = math.exp %86 : vector<2x128xf32>
    %cst_20 = arith.constant 1.000000e+00 : f32
    %88 = vector.broadcast %cst_20 : f32 to vector<2x128xf32>
    %89 = arith.addf %88, %87 : vector<2x128xf32>
    %90 = arith.divf %88, %89 : vector<2x128xf32>
    %91 = vector.extract_strided_slice %85 {offsets = [0, 64], sizes = [2, 32], strides = [1, 1]} : vector<2x128xf32> to vector<2x32xf32>
    %92 = math.tanh %91 : vector<2x32xf32>
    %93 = vector.extract_strided_slice %90 {offsets = [0, 0], sizes = [2, 32], strides = [1, 1]} : vector<2x128xf32> to vector<2x32xf32>
    %94 = vector.extract_strided_slice %90 {offsets = [0, 32], sizes = [2, 32], strides = [1, 1]} : vector<2x128xf32> to vector<2x32xf32>
    %95 = vector.extract_strided_slice %90 {offsets = [0, 96], sizes = [2, 32], strides = [1, 1]} : vector<2x128xf32> to vector<2x32xf32>
    %96 = arith.mulf %94, %80 : vector<2x32xf32>
    %97 = arith.mulf %93, %92 : vector<2x32xf32>
    %98 = arith.addf %96, %97 : vector<2x32xf32>
    %99 = math.tanh %98 : vector<2x32xf32>
    %100 = arith.mulf %95, %99 : vector<2x32xf32>
    %101 = vector.extract_strided_slice %10 {offsets = [10, 0], sizes = [2, 128], strides = [1, 1]} : vector<16x128xf32> to vector<2x128xf32>
    %cst_21 = arith.constant dense<0.000000e+00> : vector<2x128xf32>
    %102 = tpu.matmul %100, %1, %cst_21 {dimension_numbers = #tpu.dot_dimension_numbers<[1], [0], [0], [1], [0, 0, 1, 1], [], []>} : vector<2x32xf32>, vector<32x128xf32>, vector<2x128xf32> -> vector<2x128xf32>
    %103 = arith.addf %101, %102 : vector<2x128xf32>
    %104 = arith.negf %103 : vector<2x128xf32>
    %105 = math.exp %104 : vector<2x128xf32>
    %cst_22 = arith.constant 1.000000e+00 : f32
    %106 = vector.broadcast %cst_22 : f32 to vector<2x128xf32>
    %107 = arith.addf %106, %105 : vector<2x128xf32>
    %108 = arith.divf %106, %107 : vector<2x128xf32>
    %109 = vector.extract_strided_slice %103 {offsets = [0, 64], sizes = [2, 32], strides = [1, 1]} : vector<2x128xf32> to vector<2x32xf32>
    %110 = math.tanh %109 : vector<2x32xf32>
    %111 = vector.extract_strided_slice %108 {offsets = [0, 0], sizes = [2, 32], strides = [1, 1]} : vector<2x128xf32> to vector<2x32xf32>
    %112 = vector.extract_strided_slice %108 {offsets = [0, 32], sizes = [2, 32], strides = [1, 1]} : vector<2x128xf32> to vector<2x32xf32>
    %113 = vector.extract_strided_slice %108 {offsets = [0, 96], sizes = [2, 32], strides = [1, 1]} : vector<2x128xf32> to vector<2x32xf32>
    %114 = arith.mulf %112, %98 : vector<2x32xf32>
    %115 = arith.mulf %111, %110 : vector<2x32xf32>
    %116 = arith.addf %114, %115 : vector<2x32xf32>
    %117 = math.tanh %116 : vector<2x32xf32>
    %118 = arith.mulf %113, %117 : vector<2x32xf32>
    %119 = vector.extract_strided_slice %10 {offsets = [12, 0], sizes = [2, 128], strides = [1, 1]} : vector<16x128xf32> to vector<2x128xf32>
    %cst_23 = arith.constant dense<0.000000e+00> : vector<2x128xf32>
    %120 = tpu.matmul %118, %1, %cst_23 {dimension_numbers = #tpu.dot_dimension_numbers<[1], [0], [0], [1], [0, 0, 1, 1], [], []>} : vector<2x32xf32>, vector<32x128xf32>, vector<2x128xf32> -> vector<2x128xf32>
    %121 = arith.addf %119, %120 : vector<2x128xf32>
    %122 = arith.negf %121 : vector<2x128xf32>
    %123 = math.exp %122 : vector<2x128xf32>
    %cst_24 = arith.constant 1.000000e+00 : f32
    %124 = vector.broadcast %cst_24 : f32 to vector<2x128xf32>
    %125 = arith.addf %124, %123 : vector<2x128xf32>
    %126 = arith.divf %124, %125 : vector<2x128xf32>
    %127 = vector.extract_strided_slice %121 {offsets = [0, 64], sizes = [2, 32], strides = [1, 1]} : vector<2x128xf32> to vector<2x32xf32>
    %128 = math.tanh %127 : vector<2x32xf32>
    %129 = vector.extract_strided_slice %126 {offsets = [0, 0], sizes = [2, 32], strides = [1, 1]} : vector<2x128xf32> to vector<2x32xf32>
    %130 = vector.extract_strided_slice %126 {offsets = [0, 32], sizes = [2, 32], strides = [1, 1]} : vector<2x128xf32> to vector<2x32xf32>
    %131 = vector.extract_strided_slice %126 {offsets = [0, 96], sizes = [2, 32], strides = [1, 1]} : vector<2x128xf32> to vector<2x32xf32>
    %132 = arith.mulf %130, %116 : vector<2x32xf32>
    %133 = arith.mulf %129, %128 : vector<2x32xf32>
    %134 = arith.addf %132, %133 : vector<2x32xf32>
    %135 = math.tanh %134 : vector<2x32xf32>
    %136 = arith.mulf %131, %135 : vector<2x32xf32>
    %137 = vector.extract_strided_slice %10 {offsets = [14, 0], sizes = [2, 128], strides = [1, 1]} : vector<16x128xf32> to vector<2x128xf32>
    %cst_25 = arith.constant dense<0.000000e+00> : vector<2x128xf32>
    %138 = tpu.matmul %136, %1, %cst_25 {dimension_numbers = #tpu.dot_dimension_numbers<[1], [0], [0], [1], [0, 0, 1, 1], [], []>} : vector<2x32xf32>, vector<32x128xf32>, vector<2x128xf32> -> vector<2x128xf32>
    %139 = arith.addf %137, %138 : vector<2x128xf32>
    %140 = arith.negf %139 : vector<2x128xf32>
    %141 = math.exp %140 : vector<2x128xf32>
    %cst_26 = arith.constant 1.000000e+00 : f32
    %142 = vector.broadcast %cst_26 : f32 to vector<2x128xf32>
    %143 = arith.addf %142, %141 : vector<2x128xf32>
    %144 = arith.divf %142, %143 : vector<2x128xf32>
    %145 = vector.extract_strided_slice %139 {offsets = [0, 64], sizes = [2, 32], strides = [1, 1]} : vector<2x128xf32> to vector<2x32xf32>
    %146 = math.tanh %145 : vector<2x32xf32>
    %147 = vector.extract_strided_slice %144 {offsets = [0, 0], sizes = [2, 32], strides = [1, 1]} : vector<2x128xf32> to vector<2x32xf32>
    %148 = vector.extract_strided_slice %144 {offsets = [0, 32], sizes = [2, 32], strides = [1, 1]} : vector<2x128xf32> to vector<2x32xf32>
    %149 = vector.extract_strided_slice %144 {offsets = [0, 96], sizes = [2, 32], strides = [1, 1]} : vector<2x128xf32> to vector<2x32xf32>
    %150 = arith.mulf %148, %134 : vector<2x32xf32>
    %151 = arith.mulf %147, %146 : vector<2x32xf32>
    %152 = arith.addf %150, %151 : vector<2x32xf32>
    %153 = math.tanh %152 : vector<2x32xf32>
    %154 = arith.mulf %149, %153 : vector<2x32xf32>
    %cst_27 = arith.constant dense<0.000000e+00> : vector<2x64xf32>
    %155 = tpu.matmul %154, %3, %cst_27 {dimension_numbers = #tpu.dot_dimension_numbers<[1], [0], [0], [1], [0, 0, 1, 1], [], []>} : vector<2x32xf32>, vector<32x64xf32>, vector<2x64xf32> -> vector<2x64xf32>
    %156 = vector.broadcast %4 : vector<1x64xf32> to vector<2x64xf32>
    %157 = arith.addf %155, %156 : vector<2x64xf32>
    %158 = arith.negf %157 : vector<2x64xf32>
    %159 = math.exp %158 : vector<2x64xf32>
    %cst_28 = arith.constant 1.000000e+00 : f32
    %160 = vector.broadcast %cst_28 : f32 to vector<2x64xf32>
    %161 = arith.addf %160, %159 : vector<2x64xf32>
    %162 = arith.divf %160, %161 : vector<2x64xf32>
    %163 = tpu.concatenate %154, %152, %162 in 1 : vector<2x32xf32>, vector<2x32xf32>, vector<2x64xf32> -> vector<2x128xf32>
    %c0_29 = arith.constant 0 : index
    %c0_30 = arith.constant 0 : index
    %164 = vector.load %arg3[%c0_29, %c0_30] : memref<2x128xf32, #tpu.memory_space<vmem>>, vector<2x128xf32>
    tpu.vector_store %arg3[%c0_29, %c0_30], %163 {strides = array<i32>} : memref<2x128xf32, #tpu.memory_space<vmem>>, vector<2x128xf32>,
    return
  }
}

</mosaic_0001>

<bundles_post_ra>
// kernel: lstm_predictor_forward.1
= control target key start
LH: loop header
LB: loop body
LE: loop exit
PB: predicated region body
PF: predicated region fallthrough
CT: control target
= control target key end

     0   :  { %vm32_vm0 = vcmask 64512   ;;  %v1305_v0 = vmov 0.0   ;;  %vm1306_vm1 = vmmov 0   ;;  %vm114_vm2 = vcmask 261120   ;;  %s1307_s29 = smov 64   ;;  %s1524_s1 = inlined_call_operand.vmem [shape: f32[41,128], index: 1, kind: input, shape index: {}]   ;;  %s1525_s0 = inlined_call_operand.vmem [shape: f32[16,8], index: 0, kind: input, shape index: {}]   ;;  %s1526_s2 = inlined_call_operand.vmem [shape: f32[35,64], index: 2, kind: input, shape index: {}]   ;;  %s1527_s3 = inlined_call_operand.vmem [shape: f32[2,128], index: 3, kind: output, shape index: {}]  }
   0x1   :  { %1134 = vmatprep.subr.mxu1 %v1305_v0  ;;  %v14_v1 = vld [vmem:[%s1524_s1] sm:$0xff]  ;;  %1142 = vmatprep.mubr.msk.f32.mxu1 %vm1306_vm1, %v1305_v0  ;;  %v27_v4 = vld [vmem:[%s1525_s0 + $0x8] sm:$0xff]  ;;  %v1350_v5 = vld [vmem:[%s1524_s1 + $0x18] sm:$0xff]  ;;  %vm1052_vm3 = vcmask 523264  }
   0x2   :  { %v1336_v2 = vld [vmem:[%s1524_s1 + $0x20] sm:$0xff]  ;;  %1129 = vmatprep.subr.mxu0 %v14_v1  ;;  %v1356_v6 = vld [vmem:[%s1524_s1 + $0x10] sm:$0xff]  ;;  %v1364_v7 = vld [vmem:[%s1524_s1 + $0x8] sm:$0xff] }
   0x3   :  { %v26_v3 = vld [vmem:[%s1525_s0] sm:$0xff]  ;;  %1135 = vmatpush3.msra.mxu1 %v1336_v2  ;;  %1130 = vmatpush3.msra.mxu0 %v14_v1  ;;  %v1059_v9 = vld [vmem:[%s1524_s1 + $0x28] ss:$0 sm:$0xff]  ;;  %s1308_s1 = smov 32  }
   0x4   :  { %1131 = vmatprep.mubr.msk.f32.mxu0 %vm32_vm0, %v26_v3  ;;  %1136 = vmatprep.subr.mxu1 %v1305_v0  ;;  %v25_v8 = vld [vmem:[%s1526_s2 + $0x21] sm:$0x3] }
   0x5   :  { %1132 = vmatmul.mubr.msk.f32.vlgmr.msra.gmra.mxu0 %vm32_vm0, %v27_v4  ;;  %1137 = vmatpush3.msra.mxu1 %v1350_v5 }
   0x6   :  { %1145 = vmatprep.subr.mxu0 %v1305_v0  ;;  %1138 = vmatprep.subr.mxu1 %v1305_v0 }
   0x7   :  { %1146 = vmatpush3.msra.mxu0 %v1336_v2  ;;  %1139 = vmatpush3.msra.mxu1 %v1356_v6 }
   0x8   :  { %1147 = vmatprep.subr.mxu0 %v1305_v0  ;;  %1140 = vmatprep.subr.mxu1 %v1305_v0 }
   0x9   :  { %1148 = vmatpush3.msra.mxu0 %v1350_v5  ;;  %1141 = vmatpush3.msra.mxu1 %v1364_v7 }
   0xa   :  { %1149 = vmatprep.subr.mxu0 %v1305_v0  ;;  %1143 = vmatmul.mubr.msk.f32.vlgmr.msra.gmra.mxu1 %vm114_vm2, %v25_v8 }
   0xb   :  { %1150 = vmatpush3.msra.mxu0 %v1356_v6  ;;  %1153 = vmatprep.mubr.msk.f32.mxu0 %vm1306_vm1, %v1305_v0 }
   0xc   :  { %1151 = vmatprep.subr.mxu0 %v1305_v0  ;;  %1156 = vmatprep.subr.mxu1 %v1305_v0 }
   0xd   :  { %1152 = vmatpush3.msra.mxu0 %v1364_v7  ;;  %1157 = vmatpush3.msra.mxu1 %v1336_v2 }
   0xe   :  { %1164 = vmatprep.mubr.msk.f32.mxu1 %vm1306_vm1, %v1305_v0  ;;  %1158 = vmatprep.subr.mxu1 %v1305_v0 }
   0xf   :  { %1167 = vmatprep.subr.mxu0 %v1305_v0  ;;  %1159 = vmatpush3.msra.mxu1 %v1350_v5 }
  0x10   :  { %1160 = vmatprep.subr.mxu1 %v1305_v0 }
  0x11   :  { %1161 = vmatpush3.msra.mxu1 %v1356_v6 }
  0x12   :  { %1162 = vmatprep.subr.mxu1 %v1305_v0 }
  0x13   :  { %1163 = vmatpush3.msra.mxu1 %v1364_v7 }
  0x14   :  { %1178 = vmatprep.subr.mxu1 %v1305_v0 }
  0xc5   :  { %v1133_v10 = vpop.f32.mrf.mxu0 }
  0xc6   :  { %v1397_v11 = vadd.f32 %v1133_v10, %v1059_v9 }
  0xc7   :  { %v105_v12 = vpop.f32.mrf.mxu0 }
  0xc8   :  { %v1399_v13 = vadd.f32 %v1059_v9, %v105_v12 }
  0xca   :  { %v184_v14 = vpop.f32.mrf.mxu1 }
  0xcb   :  { %v188_v15 = vadd.f32 %v184_v14, %v1399_v13 }
  0xcc   :  { %v1144_v16 = vpop.f32.mrf.mxu1 }
  0xcd   :  { %1237 = vtanh.f32 %v188_v15  ;;  %v1063_v18 = vmul.f32 -1.442695, %v188_v15 }
  0xcf   :  { %1239 = vpow2.f32 %v1063_v18 }
  0xda   :  { %v1238_v17 = vpop.eup %1237 }
  0xdb   :  { %198 = vrot.lane.b32.xlu0 %v1238_v17, %s1307_s29 }
  0xdc   :  { %v1240_v19 = vpop.eup %1239 }
  0xdd   :  { %v192_v20 = vadd.f32 1.0, %v1240_v19 }
  0xdf   :  { %1241 = vrcp.f32 %v192_v20 }
  0xec   :  { %v1242_v21 = vpop.eup %1241 }
  0xed   :  { %v196_v24 = vmul.f32 %v1242_v21, %v25_v8 }
 0x14d   :  { %v199_v22 = vpop.permute.xlu0 %198 }
 0x14e   :  { %v201_v23 = vmul.f32 %v1242_v21, %v199_v22 }
 0x150   :  { %203 = vrot.lane.b32.xlu0 %v201_v23, %s1308_s1 }
 0x1c2   :  { %v204_v25 = vpop.permute.xlu0 %203 }
 0x1c3   :  { %v206_v26 = vadd.f32 %v204_v25, %v196_v24 }
 0x1c5   :  { %1243 = vtanh.f32 %v206_v26  ;;  %v300_v42 = vrot.slane %v206_v26, 6 }
 0x1d2   :  { %v1244_v27 = vpop.eup %1243 }
 0x1d3   :  { %209 = vrot.lane.b32.xlu1 %v1244_v27, %s1307_s29 }
 0x245   :  { %v210_v28 = vpop.permute.xlu1 %209 }
 0x246   :  { %v212_v29 = vmul.f32 %v1242_v21, %v210_v28 }
 0x248   :  { %214 = vrot.lane.b32.xlu1 %v212_v29, %s1308_s1 }
 0x2ba   :  { %v215_v30 = vpop.permute.xlu1 %214 }
 0x2bb   :  { %1154 = vmatmul.mubr.msk.f32.vlgmr.msra.gmra.mxu0 %vm114_vm2, %v215_v30 }
 0x2bc   :  { %1168 = vmatpush3.msra.mxu0 %v1336_v2  ;;  %1175 = vmatprep.mubr.msk.f32.mxu0 %vm1306_vm1, %v1305_v0 }
 0x2bd   :  { %1169 = vmatprep.subr.mxu0 %v1305_v0 }
 0x2be   :  { %1170 = vmatpush3.msra.mxu0 %v1350_v5 }
 0x2bf   :  { %1171 = vmatprep.subr.mxu0 %v1305_v0 }
 0x2c0   :  { %1172 = vmatpush3.msra.mxu0 %v1356_v6 }
 0x2c1   :  { %1173 = vmatprep.subr.mxu0 %v1305_v0 }
 0x2c2   :  { %1174 = vmatpush3.msra.mxu0 %v1364_v7 }
 0x2c3   :  { %1189 = vmatprep.subr.mxu0 %v1305_v0 }
 0x37b   :  { %v284_v31 = vpop.f32.mrf.mxu0 }
 0x37c   :  { %v289_v32 = vrot.slane %v284_v31, 6 }
 0x37d   :  { %v1155_v33 = vpop.f32.mrf.mxu0 }
 0x37e   :  { %v291_v34 = vadd.f32 %v289_v32, %v1399_v13 }
 0x380   :  { %1245 = vtanh.f32 %v291_v34  ;;  %v1065_v36 = vmul.f32 -1.442695, %v291_v34 }
 0x382   :  { %1247 = vpow2.f32 %v1065_v36 }
 0x38d   :  { %v1246_v35 = vpop.eup %1245 }
 0x38e   :  { %304 = vrot.lane.b32.xlu0 %v1246_v35, %s1307_s29 }
 0x38f   :  { %v1248_v37 = vpop.eup %1247 }
 0x390   :  { %v295_v38 = vadd.f32 1.0, %v1248_v37 }
 0x392   :  { %1249 = vrcp.f32 %v295_v38 }
 0x39f   :  { %v1250_v39 = vpop.eup %1249 }
 0x3a0   :  { %v302_v43 = vmul.f32 %v1250_v39, %v300_v42 }
 0x400   :  { %v305_v40 = vpop.permute.xlu0 %304 }
 0x401   :  { %v307_v41 = vmul.f32 %v1250_v39, %v305_v40 }
 0x403   :  { %309 = vrot.lane.b32.xlu1 %v307_v41, %s1308_s1 }
 0x475   :  { %v310_v44 = vpop.permute.xlu1 %309 }
 0x476   :  { %v312_v45 = vadd.f32 %v310_v44, %v302_v43 }
 0x478   :  { %1251 = vtanh.f32 %v312_v45  ;;  %v407_v62 = vrot.slane %v312_v45, 6 }
 0x485   :  { %v1252_v46 = vpop.eup %1251 }
 0x486   :  { %315 = vrot.lane.b32.xlu0 %v1252_v46, %s1307_s29 }
 0x4f8   :  { %v316_v47 = vpop.permute.xlu0 %315 }
 0x4f9   :  { %v318_v48 = vmul.f32 %v1250_v39, %v316_v47 }
 0x4fb   :  { %v320_v49 = vrot.slane %v318_v48, 2 }
 0x4fd   :  { %321 = vrot.lane.b32.xlu1 %v320_v49, %s1308_s1 }
 0x56f   :  { %v322_v50 = vpop.permute.xlu1 %321 }
 0x570   :  { %1165 = vmatmul.mubr.msk.f32.vlgmr.msra.gmra.mxu1 %vm114_vm2, %v322_v50 }
 0x571   :  { %1179 = vmatpush3.msra.mxu1 %v1336_v2  ;;  %1186 = vmatprep.mubr.msk.f32.mxu1 %vm1306_vm1, %v1305_v0 }
 0x572   :  { %1180 = vmatprep.subr.mxu1 %v1305_v0 }
 0x573   :  { %1181 = vmatpush3.msra.mxu1 %v1350_v5 }
 0x574   :  { %1182 = vmatprep.subr.mxu1 %v1305_v0 }
 0x575   :  { %1183 = vmatpush3.msra.mxu1 %v1356_v6 }
 0x576   :  { %1184 = vmatprep.subr.mxu1 %v1305_v0 }
 0x577   :  { %1185 = vmatpush3.msra.mxu1 %v1364_v7 }
 0x578   :  { %1200 = vmatprep.subr.mxu1 %v1305_v0 }
 0x630   :  { %v391_v51 = vpop.f32.mrf.mxu1 }
 0x631   :  { %v396_v52 = vrot.slane %v391_v51, 4 }
 0x632   :  { %v1166_v53 = vpop.f32.mrf.mxu1 }
 0x633   :  { %v398_v54 = vadd.f32 %v396_v52, %v1399_v13 }
 0x635   :  { %1253 = vtanh.f32 %v398_v54  ;;  %v1067_v56 = vmul.f32 -1.442695, %v398_v54 }
 0x637   :  { %1255 = vpow2.f32 %v1067_v56 }
 0x642   :  { %v1254_v55 = vpop.eup %1253 }
 0x643   :  { %411 = vrot.lane.b32.xlu0 %v1254_v55, %s1307_s29 }
 0x644   :  { %v1256_v57 = vpop.eup %1255 }
 0x645   :  { %v402_v58 = vadd.f32 1.0, %v1256_v57 }
 0x647   :  { %1257 = vrcp.f32 %v402_v58 }
 0x654   :  { %v1258_v59 = vpop.eup %1257 }
 0x655   :  { %v409_v63 = vmul.f32 %v1258_v59, %v407_v62 }
 0x6b5   :  { %v412_v60 = vpop.permute.xlu0 %411 }
 0x6b6   :  { %v414_v61 = vmul.f32 %v1258_v59, %v412_v60 }
 0x6b8   :  { %416 = vrot.lane.b32.xlu1 %v414_v61, %s1308_s1 }
 0x72a   :  { %v417_v1 = vpop.permute.xlu1 %416 }
 0x72b   :  { %v419_v3 = vadd.f32 %v417_v1, %v409_v63 }
 0x72d   :  { %1259 = vtanh.f32 %v419_v3  ;;  %v514_v25 = vrot.slane %v419_v3, 6 }
 0x73a   :  { %v1260_v4 = vpop.eup %1259 }
 0x73b   :  { %422 = vrot.lane.b32.xlu0 %v1260_v4, %s1307_s29 }
 0x7ad   :  { %v423_v8 = vpop.permute.xlu0 %422 }
 0x7ae   :  { %v425_v9 = vmul.f32 %v1258_v59, %v423_v8 }
 0x7b0   :  { %v427_v10 = vrot.slane %v425_v9, 4 }
 0x7b2   :  { %428 = vrot.lane.b32.xlu1 %v427_v10, %s1308_s1 }
 0x824   :  { %v429_v12 = vpop.permute.xlu1 %428 }
 0x825   :  { %1176 = vmatmul.mubr.msk.f32.vlgmr.msra.gmra.mxu0 %vm114_vm2, %v429_v12 }
 0x826   :  { %1190 = vmatpush3.msra.mxu0 %v1336_v2  ;;  %1197 = vmatprep.mubr.msk.f32.mxu0 %vm1306_vm1, %v1305_v0 }
 0x827   :  { %1191 = vmatprep.subr.mxu0 %v1305_v0 }
 0x828   :  { %1192 = vmatpush3.msra.mxu0 %v1350_v5 }
 0x829   :  { %1193 = vmatprep.subr.mxu0 %v1305_v0 }
 0x82a   :  { %1194 = vmatpush3.msra.mxu0 %v1356_v6 }
 0x82b   :  { %1195 = vmatprep.subr.mxu0 %v1305_v0 }
 0x82c   :  { %1196 = vmatpush3.msra.mxu0 %v1364_v7 }
 0x82d   :  { %1211 = vmatprep.subr.mxu0 %v1305_v0 }
 0x8e5   :  { %v498_v14 = vpop.f32.mrf.mxu0 }
 0x8e6   :  { %v503_v15 = vrot.slane %v498_v14, 2 }
 0x8e7   :  { %v1177_v16 = vpop.f32.mrf.mxu0 }
 0x8e8   :  { %v505_v17 = vadd.f32 %v503_v15, %v1399_v13 }
 0x8ea   :  { %1261 = vtanh.f32 %v505_v17  ;;  %v1069_v19 = vmul.f32 -1.442695, %v505_v17 }
 0x8ec   :  { %1263 = vpow2.f32 %v1069_v19 }
 0x8f7   :  { %v1262_v18 = vpop.eup %1261 }
 0x8f8   :  { %518 = vrot.lane.b32.xlu0 %v1262_v18, %s1307_s29 }
 0x8f9   :  { %v1264_v20 = vpop.eup %1263 }
 0x8fa   :  { %v509_v21 = vadd.f32 1.0, %v1264_v20 }
 0x8fc   :  { %1265 = vrcp.f32 %v509_v21 }
 0x909   :  { %v1266_v22 = vpop.eup %1265 }
 0x90a   :  { %v516_v26 = vmul.f32 %v1266_v22, %v514_v25 }
 0x96a   :  { %v519_v23 = vpop.permute.xlu0 %518 }
 0x96b   :  { %v521_v24 = vmul.f32 %v1266_v22, %v519_v23 }
 0x96d   :  { %523 = vrot.lane.b32.xlu1 %v521_v24, %s1308_s1 }
 0x9df   :  { %v524_v27 = vpop.permute.xlu1 %523 }
 0x9e0   :  { %v526_v28 = vadd.f32 %v524_v27, %v516_v26 }
 0x9e2   :  { %1267 = vtanh.f32 %v526_v28  ;;  %v618_v43 = vrot.slane %v526_v28, 6 }
 0x9ef   :  { %v1268_v13 = vpop.eup %1267 }
 0x9f0   :  { %529 = vrot.lane.b32.xlu0 %v1268_v13, %s1307_s29 }
 0xa62   :  { %v530_v29 = vpop.permute.xlu0 %529 }
 0xa63   :  { %v532_v30 = vmul.f32 %v1266_v22, %v530_v29 }
 0xa65   :  { %v534_v31 = vrot.slane %v532_v30, 6 }
 0xa67   :  { %535 = vrot.lane.b32.xlu1 %v534_v31, %s1308_s1 }
 0xad9   :  { %v536_v32 = vpop.permute.xlu1 %535 }
 0xada   :  { %1187 = vmatmul.mubr.msk.f32.vlgmr.msra.gmra.mxu1 %vm114_vm2, %v536_v32 }
 0xadb   :  { %1201 = vmatpush3.msra.mxu1 %v1336_v2  ;;  %1208 = vmatprep.mubr.msk.f32.mxu1 %vm1306_vm1, %v1305_v0 }
 0xadc   :  { %1202 = vmatprep.subr.mxu1 %v1305_v0 }
 0xadd   :  { %1203 = vmatpush3.msra.mxu1 %v1350_v5 }
 0xade   :  { %1204 = vmatprep.subr.mxu1 %v1305_v0 }
 0xadf   :  { %1205 = vmatpush3.msra.mxu1 %v1356_v6 }
 0xae0   :  { %1206 = vmatprep.subr.mxu1 %v1305_v0 }
 0xae1   :  { %1207 = vmatpush3.msra.mxu1 %v1364_v7 }
 0xae2   :  { %1222 = vmatprep.subr.mxu1 %v1305_v0 }
 0xb9a   :  { %v605_v33 = vpop.f32.mrf.mxu1 }
 0xb9b   :  { %v609_v34 = vadd.f32 %v605_v33, %v1397_v11 }
 0xb9c   :  { %v1188_v35 = vpop.f32.mrf.mxu1 }
 0xb9d   :  { %1269 = vtanh.f32 %v609_v34  ;;  %v1071_v37 = vmul.f32 -1.442695, %v609_v34 }
 0xb9f   :  { %1271 = vpow2.f32 %v1071_v37 }
 0xbaa   :  { %v1270_v36 = vpop.eup %1269 }
 0xbab   :  { %622 = vrot.lane.b32.xlu0 %v1270_v36, %s1307_s29 }
 0xbac   :  { %v1272_v38 = vpop.eup %1271 }
 0xbad   :  { %v613_v39 = vadd.f32 1.0, %v1272_v38 }
 0xbaf   :  { %1273 = vrcp.f32 %v613_v39 }
 0xbbc   :  { %v1274_v40 = vpop.eup %1273 }
 0xbbd   :  { %v620_v44 = vmul.f32 %v1274_v40, %v618_v43 }
 0xc1d   :  { %v623_v41 = vpop.permute.xlu0 %622 }
 0xc1e   :  { %v625_v42 = vmul.f32 %v1274_v40, %v623_v41 }
 0xc20   :  { %627 = vrot.lane.b32.xlu1 %v625_v42, %s1308_s1 }
 0xc92   :  { %v628_v45 = vpop.permute.xlu1 %627 }
 0xc93   :  { %v630_v46 = vadd.f32 %v628_v45, %v620_v44  ;;  %v22_v44 = vld [vmem:[%s1526_s2 + $0x10] sm:$0xff]  ;;  %v21_v45 = vld [vmem:[%s1526_s2 + $0x8] sm:$0xff] }
 0xc95   :  { %1275 = vtanh.f32 %v630_v46 }
 0xca2   :  { %v1276_v47 = vpop.eup %1275 }
 0xca3   :  { %633 = vrot.lane.b32.xlu0 %v1276_v47, %s1307_s29  ;;  %v20_v47 = vld [vmem:[%s1526_s2] sm:$0xff] }
 0xd15   :  { %v634_v48 = vpop.permute.xlu0 %633 }
 0xd16   :  { %v636_v49 = vmul.f32 %v1274_v40, %v634_v48 }
 0xd18   :  { %638 = vrot.lane.b32.xlu1 %v636_v49, %s1308_s1 }
 0xd8a   :  { %v639_v50 = vpop.permute.xlu1 %638 }
 0xd8b   :  { %1198 = vmatmul.mubr.msk.f32.vlgmr.msra.gmra.mxu0 %vm114_vm2, %v639_v50 }
 0xd8c   :  { %1212 = vmatpush3.msra.mxu0 %v1336_v2  ;;  %1219 = vmatprep.mubr.msk.f32.mxu0 %vm1306_vm1, %v1305_v0 }
 0xd8d   :  { %1213 = vmatprep.subr.mxu0 %v1305_v0 }
 0xd8e   :  { %1214 = vmatpush3.msra.mxu0 %v1350_v5 }
 0xd8f   :  { %1215 = vmatprep.subr.mxu0 %v1305_v0 }
 0xd90   :  { %1216 = vmatpush3.msra.mxu0 %v1356_v6 }
 0xd91   :  { %1217 = vmatprep.subr.mxu0 %v1305_v0 }
 0xd92   :  { %1218 = vmatpush3.msra.mxu0 %v1364_v7  ;;  %v724_v7 = vrot.slane %v630_v46, 6 }
 0xe4b   :  { %v708_v51 = vpop.f32.mrf.mxu0 }
 0xe4c   :  { %v713_v52 = vrot.slane %v708_v51, 6 }
 0xe4d   :  { %v1199_v53 = vpop.f32.mrf.mxu0 }
 0xe4e   :  { %v715_v2 = vadd.f32 %v713_v52, %v1397_v11 }
 0xe50   :  { %1277 = vtanh.f32 %v715_v2  ;;  %v1073_v55 = vmul.f32 -1.442695, %v715_v2 }
 0xe52   :  { %1279 = vpow2.f32 %v1073_v55 }
 0xe5d   :  { %v1278_v54 = vpop.eup %1277 }
 0xe5e   :  { %728 = vrot.lane.b32.xlu0 %v1278_v54, %s1307_s29 }
 0xe5f   :  { %v1280_v5 = vpop.eup %1279 }
 0xe60   :  { %v719_v56 = vadd.f32 1.0, %v1280_v5 }
 0xe62   :  { %1281 = vrcp.f32 %v719_v56 }
 0xe6f   :  { %v1282_v57 = vpop.eup %1281 }
 0xe70   :  { %v726_v59 = vmul.f32 %v1282_v57, %v724_v7 }
 0xed0   :  { %v729_v6 = vpop.permute.xlu0 %728 }
 0xed1   :  { %v731_v58 = vmul.f32 %v1282_v57, %v729_v6 }
 0xed3   :  { %733 = vrot.lane.b32.xlu1 %v731_v58, %s1308_s1 }
 0xf45   :  { %v734_v60 = vpop.permute.xlu1 %733 }
 0xf46   :  { %v736_v61 = vadd.f32 %v734_v60, %v726_v59 }
 0xf48   :  { %1283 = vtanh.f32 %v736_v61  ;;  %v831_v21 = vrot.slane %v736_v61, 6 }
 0xf55   :  { %v1284_v62 = vpop.eup %1283 }
 0xf56   :  { %739 = vrot.lane.b32.xlu0 %v1284_v62, %s1307_s29 }
 0xfc8   :  { %v740_v63 = vpop.permute.xlu0 %739 }
 0xfc9   :  { %v742_v1 = vmul.f32 %v1282_v57, %v740_v63 }
 0xfcb   :  { %v744_v3 = vrot.slane %v742_v1, 2 }
 0xfcd   :  { %745 = vrot.lane.b32.xlu1 %v744_v3, %s1308_s1 }
0x103f   :  { %v746_v4 = vpop.permute.xlu1 %745 }
0x1040   :  { %1209 = vmatmul.mubr.msk.f32.vlgmr.msra.gmra.mxu1 %vm114_vm2, %v746_v4 }
0x1041   :  { %1230 = vmatprep.mubr.msk.f32.mxu1 %vm1306_vm1, %v1305_v0 }
0x1100   :  { %v815_v8 = vpop.f32.mrf.mxu1 }
0x1101   :  { %v820_v9 = vrot.slane %v815_v8, 4 }
0x1102   :  { %v1210_v10 = vpop.f32.mrf.mxu1 }
0x1103   :  { %v822_v12 = vadd.f32 %v820_v9, %v1397_v11 }
0x1105   :  { %1285 = vtanh.f32 %v822_v12  ;;  %v1075_v15 = vmul.f32 -1.442695, %v822_v12 }
0x1107   :  { %1287 = vpow2.f32 %v1075_v15 }
0x1112   :  { %v1286_v14 = vpop.eup %1285 }
0x1113   :  { %835 = vrot.lane.b32.xlu0 %v1286_v14, %s1307_s29 }
0x1114   :  { %v1288_v16 = vpop.eup %1287 }
0x1115   :  { %v826_v17 = vadd.f32 1.0, %v1288_v16 }
0x1117   :  { %1289 = vrcp.f32 %v826_v17 }
0x1124   :  { %v1290_v18 = vpop.eup %1289 }
0x1125   :  { %v833_v22 = vmul.f32 %v1290_v18, %v831_v21 }
0x1185   :  { %v836_v19 = vpop.permute.xlu0 %835 }
0x1186   :  { %v838_v20 = vmul.f32 %v1290_v18, %v836_v19 }
0x1188   :  { %840 = vrot.lane.b32.xlu1 %v838_v20, %s1308_s1 }
0x11fa   :  { %v841_v23 = vpop.permute.xlu1 %840 }
0x11fb   :  { %v843_v24 = vadd.f32 %v841_v23, %v833_v22 }
0x11fd   :  { %1291 = vtanh.f32 %v843_v24  ;;  %v938_v40 = vrot.slane %v843_v24, 6 }
0x120a   :  { %v1292_v25 = vpop.eup %1291 }
0x120b   :  { %846 = vrot.lane.b32.xlu0 %v1292_v25, %s1307_s29 }
0x127d   :  { %v847_v26 = vpop.permute.xlu0 %846 }
0x127e   :  { %v849_v27 = vmul.f32 %v1290_v18, %v847_v26 }
0x1280   :  { %v851_v28 = vrot.slane %v849_v27, 4 }
0x1282   :  { %852 = vrot.lane.b32.xlu1 %v851_v28, %s1308_s1 }
0x12f4   :  { %v853_v13 = vpop.permute.xlu1 %852 }
0x12f5   :  { %1220 = vmatmul.mubr.msk.f32.vlgmr.msra.gmra.mxu0 %vm114_vm2, %v853_v13 }
0x13b5   :  { %v922_v29 = vpop.f32.mrf.mxu0 }
0x13b6   :  { %v927_v30 = vrot.slane %v922_v29, 2 }
0x13b7   :  { %v1221_v31 = vpop.f32.mrf.mxu0 }
0x13b8   :  { %v929_v32 = vadd.f32 %v927_v30, %v1397_v11  ;;  %v23_v11 = vld [vmem:[%s1526_s2 + $0x18] sm:$0xff] }
0x13b9   :  { %1223 = vmatpush3.msra.mxu1 %v23_v11 }
0x13ba   :  { %1293 = vtanh.f32 %v929_v32  ;;  %v1077_v34 = vmul.f32 -1.442695, %v929_v32  ;;  %1224 = vmatprep.subr.mxu1 %v1305_v0 }
0x13bb   :  { %1225 = vmatpush3.msra.mxu1 %v22_v44 }
0x13bc   :  { %1295 = vpow2.f32 %v1077_v34  ;;  %1226 = vmatprep.subr.mxu1 %v1305_v0 }
0x13bd   :  { %1227 = vmatpush3.msra.mxu1 %v21_v45 }
0x13be   :  { %1228 = vmatprep.subr.mxu1 %v1305_v0  ;;  %v1078_v0 = vld [vmem:[%s1526_s2 + $0x20] ss:$0 sm:$0xff] }
0x13bf   :  { %1229 = vmatpush3.msra.mxu1 %v20_v47 }
0x13c7   :  { %v1294_v33 = vpop.eup %1293 }
0x13c8   :  { %942 = vrot.lane.b32.xlu0 %v1294_v33, %s1307_s29 }
0x13c9   :  { %v1296_v35 = vpop.eup %1295 }
0x13ca   :  { %v933_v36 = vadd.f32 1.0, %v1296_v35 }
0x13cc   :  { %1297 = vrcp.f32 %v933_v36 }
0x13d9   :  { %v1298_v37 = vpop.eup %1297 }
0x13da   :  { %v940_v41 = vmul.f32 %v1298_v37, %v938_v40 }
0x143a   :  { %v943_v38 = vpop.permute.xlu0 %942 }
0x143b   :  { %v945_v39 = vmul.f32 %v1298_v37, %v943_v38 }
0x143d   :  { %947 = vrot.lane.b32.xlu1 %v945_v39, %s1308_s1 }
0x14af   :  { %v948_v42 = vpop.permute.xlu1 %947 }
0x14b0   :  { %v950_v43 = vadd.f32 %v948_v42, %v940_v41 }
0x14b2   :  { %1299 = vtanh.f32 %v950_v43 }
0x14bf   :  { %v1300_v46 = vpop.eup %1299 }
0x14c0   :  { %953 = vrot.lane.b32.xlu0 %v1300_v46, %s1307_s29 }
0x1532   :  { %v954_v48 = vpop.permute.xlu0 %953 }
0x1533   :  { %v956_v49 = vmul.f32 %v1298_v37, %v954_v48 }
0x1535   :  { %v962_v50 = vrot.slane %v956_v49, 6  ;;  %1043 = vrot.lane.b32.xlu0 %v956_v49, %s1308_s1 }
0x1537   :  { %963 = vrot.lane.b32.xlu1 %v962_v50, %s1308_s1 }
0x15a7   :  { %v1044_v6 = vpop.permute.xlu0 %1043 }
0x15a8   :  { %v1051_v58 = vsel %vm114_vm2, %v1044_v6, %v950_v43 }
0x15a9   :  { %v964_v51 = vpop.permute.xlu1 %963 }
0x15aa   :  { %1231 = vmatmul.mubr.msk.f32.vlgmr.msra.gmra.mxu1 %vm114_vm2, %v964_v51 }
0x166a   :  { %v1033_v52 = vpop.f32.mrf.mxu1 }
0x166b   :  { %v1034_v53 = vadd.f32 %v1078_v0, %v1033_v52 }
0x166c   :  { %v1232_v2 = vpop.f32.mrf.mxu1 }
0x166d   :  { %v1080_v54 = vmul.f32 -1.442695, %v1034_v53 }
0x166f   :  { %1301 = vpow2.f32 %v1080_v54 }
0x167c   :  { %v1302_v55 = vpop.eup %1301 }
0x167d   :  { %v1040_v5 = vadd.f32 1.0, %v1302_v55 }
0x167f   :  { %1303 = vrcp.f32 %v1040_v5 }
0x168c   :  { %v1304_v56 = vpop.eup %1303 }
0x168d   :  { %v1047_v57 = vrot.slane %v1304_v56, 2 }
0x168f   :  { %1048 = vrot.lane.b32.xlu1 %v1047_v57, %s1307_s29 }
0x1701   :  { %v1049_v7 = vpop.permute.xlu1 %1048 }
0x1702   :  { %v1053_v59 = vsel %vm1052_vm3, %v1051_v58, %v1049_v7 }
0x1703   :  { %1054 = vst [vmem:[%s1527_s3 - $0x6] sm:$0xc0] %v1053_v59 }

</bundles_post_ra>
